<compile_context>
chip_gen: v6e
topology: v6e:2x2x1
jax: 0.10.0
libtpu: 0.0.40
codegen_flags: <defaults>
</compile_context>

<pallas_src>
import functools

import jax
import jax.numpy as jnp
from jax.experimental import pallas as pl
from jax.experimental.pallas import tpu as pltpu


def _flash_kernel(inv_scale_ref, seed_ref, q_ref, k_ref, v_ref, o_ref,
                  m_sc, l_sc, acc_sc, *, dropout_p):
    ki = pl.program_id(2)
    nk = pl.num_programs(2)

    @pl.when(ki == 0)
    def _():
        m_sc[...] = jnp.full_like(m_sc, -jnp.inf)
        l_sc[...] = jnp.zeros_like(l_sc)
        acc_sc[...] = jnp.zeros_like(acc_sc)

    scale = inv_scale_ref[0]                      # f32 scalar from SMEM

    q = q_ref[0]                                  # (tq, D), native dtype
    k = k_ref[0]                                  # (tk, D)
    v = v_ref[0]                                  # (tk, D)

    # Fold the multiplicative inv_scale_factor into q once (cheaper than scaling
    # the (tq, tk) score tile), then cast back so the MXU sees the input dtype.
    qs = (q.astype(jnp.float32) * scale).astype(q.dtype)

    # s[i, j] = sum_d qs[i, d] * k[j, d]  -- contraction on the last dims,
    # no explicit transpose/copy of the K tile.
    s = jax.lax.dot_general(qs, k, (((1,), (1,)), ((), ())),
                            preferred_element_type=jnp.float32)   # (tq, tk) f32

    # Online softmax update.
    m_prev = m_sc[...]
    m_new = jnp.maximum(m_prev, jnp.max(s, axis=-1, keepdims=True))
    alpha = jnp.exp(m_prev - m_new)
    p = jnp.exp(s - m_new)                        # unnormalized probabilities

    # Dropout on the (unnormalized) probabilities; commutes with the final 1/l
    # normalization, so applying it here matches dropout(softmax(s)).
    if dropout_p > 0.0:
        step = (pl.program_id(0) * pl.num_programs(1) + pl.program_id(1)) * nk + ki
        pltpu.prng_seed(seed_ref[0] + step)
        bits = pltpu.bitcast(pltpu.prng_random_bits(p.shape), jnp.uint32)
        thresh = jnp.uint32(min(int(dropout_p * float(1 << 32)), (1 << 32) - 1))
        keep = bits >= thresh
        p = jnp.where(keep, p * (1.0 / (1.0 - dropout_p)), 0.0)

    l_sc[...] = alpha * l_sc[...] + jnp.sum(p, axis=-1, keepdims=True)
    acc_sc[...] = alpha * acc_sc[...] + jnp.dot(
        p.astype(v.dtype), v, preferred_element_type=jnp.float32)
    m_sc[...] = m_new

    @pl.when(ki == nk - 1)
    def _():
        l = l_sc[...]
        inv = pl.reciprocal(l, approx=True)
        inv = inv * (2.0 - l * inv)               # one Newton step -> ~f32 accuracy
        o_ref[0] = (acc_sc[...] * inv).astype(o_ref.dtype)


def _pick_tile(s, cap=256):
    """Largest power-of-two-ish tile <= cap that divides s (falls back to s)."""
    if s <= cap:
        return s
    t = cap
    while t >= 8:
        if s % t == 0:
            return t
        t //= 2
    return s


def sdpa_pallas(q, k, v, inv_scale_factor, dropout_p=0.0, seed=0):
    """dropout(softmax(q @ k^T * inv_scale_factor)) @ v over [B, H, S, D]."""
    B, H, S, D = q.shape
    BH = B * H
    qf = q.reshape(BH, S, D)
    kf = k.reshape(BH, S, D)
    vf = v.reshape(BH, S, D)

    tq = _pick_tile(S, 256)
    tk = _pick_tile(S, 256)

    inv_scale = jnp.asarray(inv_scale_factor, jnp.float32).reshape((1,))
    seed_arr = jnp.asarray(seed, jnp.int32).reshape((1,))

    kernel = functools.partial(_flash_kernel, dropout_p=float(dropout_p))

    out = pl.pallas_call(
        kernel,
        out_shape=jax.ShapeDtypeStruct((BH, S, D), q.dtype),
        grid_spec=pltpu.PrefetchScalarGridSpec(
            num_scalar_prefetch=2,                # inv_scale and seed land in SMEM
            grid=(BH, S // tq, S // tk),          # reduction (kv) axis last
            in_specs=[
                pl.BlockSpec((1, tq, D), lambda b, qi, ki, sc, sd: (b, qi, 0)),
                pl.BlockSpec((1, tk, D), lambda b, qi, ki, sc, sd: (b, ki, 0)),
                pl.BlockSpec((1, tk, D), lambda b, qi, ki, sc, sd: (b, ki, 0)),
            ],
            out_specs=pl.BlockSpec((1, tq, D), lambda b, qi, ki, sc, sd: (b, qi, 0)),
            scratch_shapes=[
                pltpu.VMEM((tq, 1), jnp.float32),     # running max
                pltpu.VMEM((tq, 1), jnp.float32),     # running denominator
                pltpu.VMEM((tq, D), jnp.float32),     # output accumulator
            ],
        ),
        compiler_params=pltpu.CompilerParams(
            dimension_semantics=("parallel", "parallel", "arbitrary"),
            vmem_limit_bytes=40 * 1024 * 1024,
        ),
    )(inv_scale, seed_arr, qf, kf, vf)

    return out.reshape(B, H, S, D)


if __name__ == "__main__":
    key = jax.random.PRNGKey(0)
    kq, kk, kv = jax.random.split(key, 3)

    B, H, S, D = 2, 2, 8, 32
    q = jax.random.normal(kq, (B, H, S, D), dtype=jnp.float32)
    k = jax.random.normal(kk, (B, H, S, D), dtype=jnp.float32)
    v = jax.random.normal(kv, (B, H, S, D), dtype=jnp.float32)

    inv_scale_factor = 0.001
    dropout_p = 0.0  # dropout is stochastic; use 0.0 for a deterministic check

    out = sdpa_pallas(q, k, v, inv_scale_factor, dropout_p)
    jax.block_until_ready(out)

    # reference check (pure JAX) for the deterministic (p=0) path
    s = jnp.einsum("bhqd,bhkd->bhqk", q, k) * inv_scale_factor
    ref = jnp.einsum("bhqk,bhkd->bhqd", jax.nn.softmax(s, axis=-1), v)
    assert out.shape == ref.shape
    assert jnp.allclose(out, ref, atol=1e-5, rtol=1e-5), "mismatch vs reference"

    print("KERNEL_OK")
</pallas_src>

<mosaic_0001>
module attributes {stable_mosaic.version = 11 : i64} {
  func.func @_flash_kernel(%arg0: i32, %arg1: i32, %arg2: i32, %arg3: memref<1xf32, #tpu.memory_space<smem>>, %arg4: memref<1xi32, #tpu.memory_space<smem>>, %arg5: memref<1x8x32xf32, #tpu.memory_space<vmem>>, %arg6: memref<1x8x32xf32, #tpu.memory_space<vmem>>, %arg7: memref<1x8x32xf32, #tpu.memory_space<vmem>>, %arg8: memref<1x8x32xf32, #tpu.memory_space<vmem>>, %arg9: memref<8x1xf32, #tpu.memory_space<vmem>>, %arg10: memref<8x1xf32, #tpu.memory_space<vmem>>, %arg11: memref<8x32xf32, #tpu.memory_space<vmem>>) attributes {dimension_semantics = [#tpu.dimension_semantics<parallel>, #tpu.dimension_semantics<parallel>, #tpu.dimension_semantics<arbitrary>], iteration_bounds = array<i64: 4, 1, 1>, scalar_prefetch = 2 : i64, scratch_operands = 3 : i64, tpu.core_type = #tpu.core_type<tc>, window_params = [{transform_indices = @transform_0, window_bounds = array<i64: 1, 8, 32>}, {transform_indices = @transform_1, window_bounds = array<i64: 1, 8, 32>}, {transform_indices = @transform_2, window_bounds = array<i64: 1, 8, 32>}, {transform_indices = @transform_3, window_bounds = array<i64: 1, 8, 32>}]} {
    %c0_i32 = arith.constant 0 : i32
    %0 = arith.cmpi eq, %arg2, %c0_i32 : i32
    %1 = arith.extui %0 : i1 to i32
    %c0_i32_0 = arith.constant 0 : i32
    %2 = arith.cmpi ne, %1, %c0_i32_0 : i32
    scf.if %2 {
      %cst_27 = arith.constant 0xFF800000 : f32
      %38 = vector.broadcast %cst_27 : f32 to vector<8x1xf32>
      %c0_28 = arith.constant 0 : index
      %c0_29 = arith.constant 0 : index
      %39 = vector.load %arg9[%c0_28, %c0_29] : memref<8x1xf32, #tpu.memory_space<vmem>>, vector<8x1xf32>
      tpu.vector_store %arg9[%c0_28, %c0_29], %38 {strides = array<i32>} : memref<8x1xf32, #tpu.memory_space<vmem>>, vector<8x1xf32>,
      %cst_30 = arith.constant 0.000000e+00 : f32
      %40 = vector.broadcast %cst_30 : f32 to vector<8x1xf32>
      %c0_31 = arith.constant 0 : index
      %c0_32 = arith.constant 0 : index
      %41 = vector.load %arg10[%c0_31, %c0_32] : memref<8x1xf32, #tpu.memory_space<vmem>>, vector<8x1xf32>
      tpu.vector_store %arg10[%c0_31, %c0_32], %40 {strides = array<i32>} : memref<8x1xf32, #tpu.memory_space<vmem>>, vector<8x1xf32>,
      %cst_33 = arith.constant 0.000000e+00 : f32
      %42 = vector.broadcast %cst_33 : f32 to vector<8x32xf32>
      %c0_34 = arith.constant 0 : index
      %c0_35 = arith.constant 0 : index
      %43 = vector.load %arg11[%c0_34, %c0_35] : memref<8x32xf32, #tpu.memory_space<vmem>>, vector<8x32xf32>
      tpu.vector_store %arg11[%c0_34, %c0_35], %42 {strides = array<i32>} : memref<8x32xf32, #tpu.memory_space<vmem>>, vector<8x32xf32>,
    } else {
    }
    %c0 = arith.constant 0 : index
    %3 = memref.load %arg3[%c0] : memref<1xf32, #tpu.memory_space<smem>>
    %c0_1 = arith.constant 0 : index
    %c0_2 = arith.constant 0 : index
    %c0_3 = arith.constant 0 : index
    %4 = vector.load %arg5[%c0_1, %c0_2, %c0_3] : memref<1x8x32xf32, #tpu.memory_space<vmem>>, vector<1x8x32xf32>
    %5 = vector.shape_cast %4 : vector<1x8x32xf32> to vector<8x32xf32>
    %c0_4 = arith.constant 0 : index
    %c0_5 = arith.constant 0 : index
    %c0_6 = arith.constant 0 : index
    %6 = vector.load %arg6[%c0_4, %c0_5, %c0_6] : memref<1x8x32xf32, #tpu.memory_space<vmem>>, vector<1x8x32xf32>
    %7 = vector.shape_cast %6 : vector<1x8x32xf32> to vector<8x32xf32>
    %c0_7 = arith.constant 0 : index
    %c0_8 = arith.constant 0 : index
    %c0_9 = arith.constant 0 : index
    %8 = vector.load %arg7[%c0_7, %c0_8, %c0_9] : memref<1x8x32xf32, #tpu.memory_space<vmem>>, vector<1x8x32xf32>
    %9 = vector.shape_cast %8 : vector<1x8x32xf32> to vector<8x32xf32>
    %10 = vector.broadcast %3 : f32 to vector<8x32xf32>
    %11 = arith.mulf %5, %10 : vector<8x32xf32>
    %cst = arith.constant dense<0.000000e+00> : vector<8x8xf32>
    %12 = tpu.matmul %11, %7, %cst {dimension_numbers = #tpu.dot_dimension_numbers<[1], [1], [0], [0], [0, 0, 1, 0], [], []>} : vector<8x32xf32>, vector<8x32xf32>, vector<8x8xf32> -> vector<8x8xf32>
    %c0_10 = arith.constant 0 : index
    %c0_11 = arith.constant 0 : index
    %13 = vector.load %arg9[%c0_10, %c0_11] : memref<8x1xf32, #tpu.memory_space<vmem>>, vector<8x1xf32>
    %cst_12 = arith.constant dense<0xFF800000> : vector<8xf32>
    %14 = vector.multi_reduction <maximumf>, %12, %cst_12 [1] : vector<8x8xf32> to vector<8xf32>
    %15 = vector.shape_cast %14 : vector<8xf32> to vector<8x1xf32>
    %16 = arith.maximumf %13, %15 : vector<8x1xf32>
    %17 = arith.subf %13, %16 : vector<8x1xf32>
    %18 = math.exp %17 : vector<8x1xf32>
    %19 = vector.broadcast %16 : vector<8x1xf32> to vector<8x8xf32>
    %20 = arith.subf %12, %19 : vector<8x8xf32>
    %21 = math.exp %20 : vector<8x8xf32>
    %c0_13 = arith.constant 0 : index
    %c0_14 = arith.constant 0 : index
    %22 = vector.load %arg10[%c0_13, %c0_14] : memref<8x1xf32, #tpu.memory_space<vmem>>, vector<8x1xf32>
    %23 = arith.mulf %18, %22 : vector<8x1xf32>
    %cst_15 = arith.constant dense<0.000000e+00> : vector<8xf32>
    %24 = vector.multi_reduction <add>, %21, %cst_15 [1] : vector<8x8xf32> to vector<8xf32>
    %25 = vector.shape_cast %24 : vector<8xf32> to vector<8x1xf32>
    %26 = arith.addf %23, %25 : vector<8x1xf32>
    %c0_16 = arith.constant 0 : index
    %c0_17 = arith.constant 0 : index
    %27 = vector.load %arg10[%c0_16, %c0_17] : memref<8x1xf32, #tpu.memory_space<vmem>>, vector<8x1xf32>
    tpu.vector_store %arg10[%c0_16, %c0_17], %26 {strides = array<i32>} : memref<8x1xf32, #tpu.memory_space<vmem>>, vector<8x1xf32>,
    %c0_18 = arith.constant 0 : index
    %c0_19 = arith.constant 0 : index
    %28 = vector.load %arg11[%c0_18, %c0_19] : memref<8x32xf32, #tpu.memory_space<vmem>>, vector<8x32xf32>
    %29 = vector.broadcast %18 : vector<8x1xf32> to vector<8x32xf32>
    %30 = arith.mulf %29, %28 : vector<8x32xf32>
    %cst_20 = arith.constant dense<0.000000e+00> : vector<8x32xf32>
    %31 = tpu.matmul %21, %9, %cst_20 {dimension_numbers = #tpu.dot_dimension_numbers<[1], [0], [0], [1], [0, 0, 1, 1], [], []>} : vector<8x8xf32>, vector<8x32xf32>, vector<8x32xf32> -> vector<8x32xf32>
    %32 = arith.addf %30, %31 : vector<8x32xf32>
    %c0_21 = arith.constant 0 : index
    %c0_22 = arith.constant 0 : index
    %33 = vector.load %arg11[%c0_21, %c0_22] : memref<8x32xf32, #tpu.memory_space<vmem>>, vector<8x32xf32>
    tpu.vector_store %arg11[%c0_21, %c0_22], %32 {strides = array<i32>} : memref<8x32xf32, #tpu.memory_space<vmem>>, vector<8x32xf32>,
    %c0_23 = arith.constant 0 : index
    %c0_24 = arith.constant 0 : index
    %34 = vector.load %arg9[%c0_23, %c0_24] : memref<8x1xf32, #tpu.memory_space<vmem>>, vector<8x1xf32>
    tpu.vector_store %arg9[%c0_23, %c0_24], %16 {strides = array<i32>} : memref<8x1xf32, #tpu.memory_space<vmem>>, vector<8x1xf32>,
    %c0_i32_25 = arith.constant 0 : i32
    %35 = arith.cmpi eq, %arg2, %c0_i32_25 : i32
    %36 = arith.extui %35 : i1 to i32
    %c0_i32_26 = arith.constant 0 : i32
    %37 = arith.cmpi ne, %36, %c0_i32_26 : i32
    scf.if %37 {
      %c0_27 = arith.constant 0 : index
      %c0_28 = arith.constant 0 : index
      %38 = vector.load %arg10[%c0_27, %c0_28] : memref<8x1xf32, #tpu.memory_space<vmem>>, vector<8x1xf32>
      %39 = tpu.reciprocal %38 {approx = true} : vector<8x1xf32> -> vector<8x1xf32>
      %40 = arith.mulf %38, %39 : vector<8x1xf32>
      %cst_29 = arith.constant 2.000000e+00 : f32
      %41 = vector.broadcast %cst_29 : f32 to vector<8x1xf32>
      %42 = arith.subf %41, %40 : vector<8x1xf32>
      %43 = arith.mulf %39, %42 : vector<8x1xf32>
      %c0_30 = arith.constant 0 : index
      %c0_31 = arith.constant 0 : index
      %44 = vector.load %arg11[%c0_30, %c0_31] : memref<8x32xf32, #tpu.memory_space<vmem>>, vector<8x32xf32>
      %45 = vector.broadcast %43 : vector<8x1xf32> to vector<8x32xf32>
      %46 = arith.mulf %44, %45 : vector<8x32xf32>
      %c0_32 = arith.constant 0 : index
      %c0_33 = arith.constant 0 : index
      %c0_34 = arith.constant 0 : index
      %47 = vector.load %arg8[%c0_32, %c0_33, %c0_34] : memref<1x8x32xf32, #tpu.memory_space<vmem>>, vector<1x8x32xf32>
      %48 = vector.shape_cast %47 : vector<1x8x32xf32> to vector<8x32xf32>
      %49 = vector.shape_cast %46 : vector<8x32xf32> to vector<1x8x32xf32>
      tpu.vector_store %arg8[%c0_32, %c0_33, %c0_34], %49 {strides = array<i32>} : memref<1x8x32xf32, #tpu.memory_space<vmem>>, vector<1x8x32xf32>,
    } else {
    }
    return
  }
  func.func @transform_0(%arg0: i32, %arg1: i32, %arg2: i32, %arg3: memref<1xf32, #tpu.memory_space<smem>>, %arg4: memref<1xi32, #tpu.memory_space<smem>>) -> (i32, i32, i32) {
    %c0_i32 = arith.constant 0 : i32
    %c0_i32_0 = arith.constant 0 : i32
    return %arg0, %arg1, %c0_i32 : i32, i32, i32
  }
  func.func @transform_1(%arg0: i32, %arg1: i32, %arg2: i32, %arg3: memref<1xf32, #tpu.memory_space<smem>>, %arg4: memref<1xi32, #tpu.memory_space<smem>>) -> (i32, i32, i32) {
    %c0_i32 = arith.constant 0 : i32
    %c0_i32_0 = arith.constant 0 : i32
    return %arg0, %arg2, %c0_i32 : i32, i32, i32
  }
  func.func @transform_2(%arg0: i32, %arg1: i32, %arg2: i32, %arg3: memref<1xf32, #tpu.memory_space<smem>>, %arg4: memref<1xi32, #tpu.memory_space<smem>>) -> (i32, i32, i32) {
    %c0_i32 = arith.constant 0 : i32
    %c0_i32_0 = arith.constant 0 : i32
    return %arg0, %arg2, %c0_i32 : i32, i32, i32
  }
  func.func @transform_3(%arg0: i32, %arg1: i32, %arg2: i32, %arg3: memref<1xf32, #tpu.memory_space<smem>>, %arg4: memref<1xi32, #tpu.memory_space<smem>>) -> (i32, i32, i32) {
    %c0_i32 = arith.constant 0 : i32
    %c0_i32_0 = arith.constant 0 : i32
    return %arg0, %arg1, %c0_i32 : i32, i32, i32
  }
}

</mosaic_0001>

<bundles_post_ra>
// kernel: tpu_custom_call.1
= control target key start
LH: loop header
LB: loop body
LE: loop exit
PB: predicated region body
PF: predicated region fallthrough
CT: control target
= control target key end

     0   :  { %s1189_s0 = inlined_call_operand.<no memory space> [shape: f32[1], index: 0, kind: input, shape index: {}]   ;;  %s1190_s1 = inlined_call_operand.<no memory space> [shape: s32[1], index: 1, kind: input, shape index: {}]   ;;  %s1191_s2 = inlined_call_operand.hbm [shape: f32[4,8,32], index: 2, kind: input, shape index: {}]   ;;  %s1192_s3 = inlined_call_operand.hbm [shape: f32[4,8,32], index: 3, kind: input, shape index: {}]   ;;  %s1193_s4 = inlined_call_operand.hbm [shape: f32[4,8,32], index: 4, kind: input, shape index: {}]   ;;  %s1194_s5 = inlined_call_operand.hbm [shape: f32[4,8,32], index: 5, kind: output, shape index: {}]  }
   0x1   :  { %1198 = sst [smem:[#allocation20_spill]] %s1192_s3 }
   0x2   :  { %10 = sst [smem:[#allocation6]] %s1189_s0 }
   0x3   :  { %12 = vsyncpa [#allocation9], 0 }
   0x4   :  { %14 = vsyncpa [#allocation9 + $0x1], 0 }
   0x5   :  { %15 = vsyncpa [#allocation12], 0 }
   0x6   :  { %17 = vsyncpa [#allocation12 + $0x1], 0 }
   0x7   :  { %18 = vsyncpa [#allocation10], 0 }
   0x8   :  { %20 = vsyncpa [#allocation10 + $0x1], 0  ;;  %s981_s1 = smov 0   ;;  %s983_s20 = smov 0  }
   0x9   :  { %s985_s21 = smov 0   ;;  %s987_s22 = smov 0  }
   0xa   :  { %s989_s23 = smov 0   ;;  %s991_s24 = smov 0  }
   0xb LB: > { %1199 = sst [smem:[#allocation18_spill]] %s934_s23  ;;  %s1012_s0 = sadd.s32 4294967295, %s938_s24   ;;  %s938_s24 = sphi %s991_s24, %s26_s24   ;;  %s934_s23 = sphi %s989_s23, %s1210_s23   ;;  %s930_s22 = sphi %s987_s22, %s1209_s22   ;;  %s926_s21 = sphi %s985_s21, %s1213_s21   ;;  %s922_s20 = sphi %s983_s20, %s1212_s20   ;;  %s918_s1 = sphi %s981_s1, %s1211_s1  }
   0xc   : > { %s651_s25 = sadd.s32 4294967294, %s938_s24   ;;  %s45_s26 = sadd.s32 1, %s934_s23 }
   0xd   : > { %s54_s27 = sadd.s32 1, %s926_s21  ;;  %p47_p0 = scmp.ge.s32.totalorder %s45_s26, 4 }
   0xe   : > { %p61_p1 = scmp.ne.s32.totalorder %s926_s21, %s922_s20  ;;  %p62_p2 = scmp.eq.s32.totalorder %s938_s24, 0 }
   0xf   : > { %p67_p3 = scmp.ne.s32.totalorder %s922_s20, %s918_s1  ;;  %s1215_s26 = smov (%p47_p0, %s45_s26), 0 }
  0x10   : > { %1200 = sst [smem:[#allocation19_spill]] %s1215_s26  ;;  %p1024_p4 = por %p62_p2, %p61_p1 }
  0x11   : > { %p68_p5 = scmp.eq.s32.totalorder %s1012_s0, 0  ;;  %s49_s29 = ssub.s32 %s934_s23, %s1215_s26 }
  0x12   : > { %p149_p6 = scmp.eq.s32.totalorder %s1012_s0, 3  ;;  %p52_p7 = scmp.eq.s32.totalorder %s49_s29, 0 }
  0x13   : > { %p1032_p8 = por %p68_p5, %p67_p3  ;;  %p155_p10 = scmp.eq.s32.totalorder %s651_s25, 3 }
  0x14   : > { %p1036_p9 = por %p149_p6, %p61_p1  ;;  %p708_p12 = scmp.lt.s32.totalorder %s938_s24, 4 }
  0x15   : > { %s1041_s7 = scalar_select %p52_p7, %s926_s21, %s54_s27  }
  0x16   : > { %p1043_p11 = por %p155_p10, %p67_p3  ;;  %s1195_s9 = sand.u32 1, %s926_s21  }
  0x17   : > { %s1051_s10 = sshll.u32 %s1195_s9, 3  ;;  %s1054_s11 = sshll.u32 %s934_s23, 7 }
  0x18   : > { %p1058_p13 = pnand %p708_p12, %p1024_p4  ;;  %s194_s13 = sand.u32 1, %s938_s24  }
  0x19   : > { %s1206_s3 = sld [smem:[#allocation20_spill]]  ;;  %s198_s17 = scalar_lea.vmem [#allocation11], %s1051_s10 }
  0x1a   : > { %s206_s18 = sshll.u32 %s198_s17, 4  ;;  %p660_p0 = scmp.ge.s32.totalorder %s938_s24, 1  ;;  %s207_s18 = int_to_ptr.vmem [resolvable:$true] %s206_s18 }
  0x1b   : > { %p230_p1 = scmp.lt.s32.totalorder %s938_s24, 5  ;;  %s1070_s19 = scalar_lea.sflag [#allocation12], %s194_s13 }
  0x1c   : > { %p772_p2 = pneg %p1058_p13  ;;  %s783_s25 = scalar_lea.vmem %s207_s18, 128 }
  0x1d   : > { %p784_p3 = scmp.ne.s32.totalorder %s207_s18, %s783_s25  ;;  %s940_s27 = smov [#allocation11]  }
  0x1e   : > { %s788_s28 = sshll.u32 %s940_s27, 4  ;;  %s789_s28 = int_to_ptr.vmem [resolvable:$false] %s788_s28 }
  0x1f   : > { %s204_s16 = scalar_lea.hbm %s1206_s3, %s1054_s11  ;;  %p786_p4 = pnand %p784_p3, %p772_p2 }
  0x20   : > { %s790_s29 = scalar_lea.vmem %s789_s28, 256  ;;  %p791_p6 = scmp.lt.s32.totalorder %s207_s18, %s789_s28 }
  0x21   : > { %p787_p5 = pneg %p786_p4  ;;  %p792_p7 = scmp.lt.s32.totalorder %s790_s29, %s783_s25 }
  0x23   : > { %p793_p10 = por %p792_p7, %p791_p6 }
  0x25   : > { %p794_p12 = pnand %p793_p10, %p787_p5 }
  0x27   : > { %797 = shalt.err (!%p794_p12)
}
  0x28   : > { %700 = dma.hbm_to_vmem [thread:$0]  (!%p1058_p13), %s204_s16, 128, %s207_s18, %s1070_s19  }
  0x29   : > { %p1084_p3 = pnand %p660_p0, %p230_p1  ;;  %s185_s17 = scalar_lea.hbm %s1191_s2, %s1054_s11 }
  0x2a   : > { %s179_s25 = scalar_lea.vmem [#allocation8], %s1051_s10  ;;  %s223_s9 = scalar_lea.hbm %s1193_s4, %s1054_s11 }
  0x2b   : > { %s187_s27 = sshll.u32 %s179_s25, 4  ;;  %s1208_s3 = sand.u32 1, %s926_s21   ;;  %s188_s27 = int_to_ptr.vmem [resolvable:$true] %s187_s27 }
  0x2c   : > { %s176_s26 = scalar_lea.sflag [#allocation9], %s1208_s3  ;;  %s811_s16 = scalar_lea.vmem %s188_s27, 128 }
  0x2d   : > { %p812_p4 = scmp.ne.s32.totalorder %s188_s27, %s811_s16  ;;  %s941_s18 = smov [#allocation8]  }
  0x2e   : > { %s816_s23 = sshll.u32 %s941_s18, 4  ;;  %s817_s23 = int_to_ptr.vmem [resolvable:$false] %s816_s23 }
  0x2f   : > { %p814_p0 = pnand %p812_p4, %p772_p2  ;;  %s818_s14 = scalar_lea.vmem %s817_s23, 256 }
  0x30   : > { %p819_p5 = scmp.lt.s32.totalorder %s188_s27, %s817_s23  ;;  %p820_p6 = scmp.lt.s32.totalorder %s818_s14, %s811_s16 }
  0x31   : > { %p815_p1 = pneg %p814_p0 }
  0x32   : > { %p821_p7 = por %p820_p6, %p819_p5 }
  0x34   : > { %p822_p10 = pnand %p821_p7, %p815_p1 }
  0x36   : > { %825 = shalt.err (!%p822_p10)
}
  0x37   : > { %697 = dma.hbm_to_vmem [thread:$0]  (!%p1058_p13), %s185_s17, 128, %s188_s27, %s176_s26  }
  0x38   : > { %s217_s3 = scalar_lea.vmem [#allocation13], %s1051_s10  ;;  %s942_s28 = smov [#allocation13]  }
  0x39   : > { %s225_s15 = sshll.u32 %s217_s3, 4  ;;  %s844_s23 = sshll.u32 %s942_s28, 4  ;;  %s226_s15 = int_to_ptr.vmem [resolvable:$true] %s225_s15  ;;  %s845_s23 = int_to_ptr.vmem [resolvable:$false] %s844_s23 }
  0x3a   : > { %s839_s25 = scalar_lea.vmem %s226_s15, 128  ;;  %s846_s29 = scalar_lea.vmem %s845_s23, 256 }
  0x3b   : > { %p840_p12 = scmp.ne.s32.totalorder %s226_s15, %s839_s25  ;;  %p847_p1 = scmp.lt.s32.totalorder %s226_s15, %s845_s23 }
  0x3c   : > { %p848_p5 = scmp.lt.s32.totalorder %s846_s29, %s839_s25 }
  0x3d   : > { %p842_p4 = pnand %p840_p12, %p772_p2 }
  0x3e   : > { %p849_p6 = por %p848_p5, %p847_p1 }
  0x3f   : > { %p843_p0 = pneg %p842_p4 }
  0x41   : > { %p850_p7 = pnand %p849_p6, %p843_p0 }
  0x43   : > { %853 = shalt.err (!%p850_p7)
}
  0x44   : > { %703 = dma.hbm_to_vmem [thread:$0]  (!%p1058_p13), %s223_s9, 128, %s226_s15, %s1070_s19  }
  0x45   : > { %234 = sbr.rel (%p1084_p3) target bundleno = 871 (0x367), region = 32  ;;  %s1119_s17 = sand.u32 (!%p1084_p3), 1, %s922_s20  }
  0x46   : > { %s1122_s27 = sshll.u32 (!%p1084_p3), %s1119_s17, 3  ;;  %s237_s12 = scalar_lea.sflag (!%p1084_p3), [#allocation9], %s1119_s17 }
  0x47   : > { %s240_s16 = scalar_lea.vmem (!%p1084_p3), [#allocation8], %s1122_s27 }
  0x4a   : > { %905 = dma.done.wait (%p1032_p8), %s237_s12, 128  }
  0x4b   : > { %907 = vsyncadd (%p1032_p8), %s237_s12, 4294967168  ;;  %s245_s9 = sand.u32 1, %s1012_s0   ;;  %s249_s19 = scalar_lea.vmem [#allocation11], %s1122_s27 }
  0x4c   : > { %s246_s11 = scalar_lea.sflag [#allocation12], %s245_s9 }
  0x4d   : > { %909 = dma.done.wait (%p1032_p8), %s246_s11, 256  }
  0x4e   : > { %911 = vsyncadd (%p1032_p8), %s246_s11, 4294967040  ;;  %vm298_vm0 = vcmask 261120   ;;  %v943_v0 = vmov 0.0   ;;  %vm944_vm1 = vmmov 0   ;;  %s300_s13 = sld [smem:[#allocation6]]  ;;  %v302_v1 = vld [vmem:[%s249_s19] sm:$0xff] }
  0x4f   : > { %676 = vmatprep.subr.mxu0 %v943_v0  ;;  %299 = vst.msk [vmem:[#allocation4] sm:$0xff] %vm298_vm0, %v943_v0  ;;  %678 = vmatprep.mubr.msk.f32.mxu0 %vm944_vm1, %v943_v0  ;;  %v301_v2 = vld [vmem:[%s240_s16] sm:$0xff]  ;;  %vm295_vm2 = vcmask 7168   ;;  %v945_v5 = vmov -inf   ;;  %vm384_vm3 = vcmask 64512   ;;  %v946_v9 = vmov 0  }
  0x50   : > { %681 = vmatprep.subr.mxu1 %v943_v0  ;;  %683 = vmatprep.mubr.msk.f32.mxu1 %vm944_vm1, %v943_v0  ;;  %296 = vst.msk [vmem:[#allocation2] sm:$0xff] %vm295_vm2, %v945_v5  ;;  %297 = vst.msk [vmem:[#allocation3] sm:$0xff] %vm295_vm2, %v943_v0  ;;  %s258_s0 = scalar_lea.vmem [#allocation13], %s1122_s27  ;;  %s669_s30 = sshll.u32 %s930_s22, 7 }
  0x51   : > { %677 = vmatpush3.xpose.msk.msra.mxu0 %vm298_vm0, %v302_v1  ;;  %762 = vset.pattern.permute.xlu0 %v946_v9  ;;  %v303_v14 = vld [vmem:[%s258_s0] sm:$0xff]  ;;  %s290_s18 = scalar_lea.vmem [#allocation14], %s1122_s27  ;;  %s520_s25 = scalar_lea.hbm %s1194_s5, %s669_s30 }
  0x52   : > { %763 = vset.pattern.permute.xlu1 %v946_v9  ;;  %682 = vmatpush3.msra.mxu1 %v303_v14  ;;  %s522_s14 = sshll.u32 %s290_s18, 4  ;;  %s508_s28 = scalar_lea.sflag [#allocation10], %s1119_s17  ;;  %s523_s14 = int_to_ptr.vmem [resolvable:$true] %s522_s14 }
  0x53   : > { %s854_s23 = scalar_lea.vmem %s523_s14, 128  ;;  %s947_s29 = smov [#allocation14]  }
  0x54   : > { %v304_v3 = vstv %s300_s13  ;;  %p855_p8 = scmp.ne.s32.totalorder %s523_s14, %s854_s23  ;;  %s858_s22 = sshll.u32 %s947_s29, 4  ;;  %s859_s22 = int_to_ptr.vmem [resolvable:$false] %s858_s22 }
  0x55   : > { %v305_v4 = vmul.f32 %v304_v3, %v301_v2  ;;  %s860_s26 = scalar_lea.vmem %s859_s22, 256  ;;  %p861_p3 = scmp.lt.s32.totalorder %s523_s14, %s859_s22 }
  0x56   : > { %v408_v31 = vld [vmem:[#allocation4] sm:$0xff]  ;;  %p856_p13 = pnand %p855_p8, %p1036_p9  ;;  %p862_p10 = scmp.lt.s32.totalorder %s860_s26, %s854_s23 }
  0x57   : > { %679 = vmatmul.mubr.msk.f32.vlgmr.msra.gmra.mxu0 %vm298_vm0, %v305_v4  ;;  %v383_v10 = vld [vmem:[#allocation2] sm:$0xff]  ;;  %v400_v22 = vld [vmem:[#allocation3] sm:$0xff] }
  0x58   : > { %p857_p2 = pneg %p856_p13  ;;  %p863_p12 = por %p862_p10, %p861_p3 }
  0x5a   : > { %p864_p4 = pnand %p863_p12, %p857_p2 }
 0x117   : > { %v379_v6 = vpop.f32.mrf.mxu0 }
 0x118   : > { %v385_v7 = vsel %vm384_vm3, %v379_v6, -inf }
 0x119   : > { %386 = vmax.xlane.f32.xlu0 %v385_v7  ;;  %v680_v8 = vpop.f32.mrf.mxu0 }
 0x1a2   : > { %v387_v11 = vpop.xlane.xlu0 %386 }
 0x1a3   : > { %v388_v12 = vmax.f32 %v383_v10, %v387_v11 }
 0x1a5   : > { %v389_v13 = vsub.f32 %v383_v10, %v388_v12  ;;  %490 = vst.msk [vmem:[#allocation2] sm:$0xff] %vm295_vm2, %v388_v12  ;;  %394 = vperm.xlu0 %762, %v388_v12  }
 0x1a7   : > { %v390_v19 = vmul.f32 1.442695, %v389_v13 }
 0x220   : > { %v395_v15 = vpop.permute.xlu0 %394 }
 0x221   : > { %v397_v16 = vsub.f32 %v379_v6, %v395_v15 }
 0x223   : > { %v398_v17 = vmul.f32 1.442695, %v397_v16 }
 0x225   : > { %764 = vpow2.f32 %v398_v17 }
 0x226   : > { %766 = vpow2.f32 %v390_v19 }
 0x232   : > { %v765_v18 = vpop.eup %764 }
 0x233   : > { %684 = vmatmul.mubr.msk.f32.vlgmr.msra.gmra.mxu1 %vm384_vm3, %v765_v18  ;;  %v402_v20 = vsel %vm384_vm3, %v765_v18, 0.0  ;;  %v767_v21 = vpop.eup %766 }
 0x234   : > { %403 = vadd.xlane.f32.xlu1 %v402_v20  ;;  %v401_v23 = vmul.f32 %v767_v21, %v400_v22 }
 0x245   : > { %411 = vperm.xlu1 %763, %v767_v21  }
 0x2bd   : > { %v404_v24 = vpop.xlane.xlu1 %403 }
 0x2be   : > { %v405_v25 = vadd.f32 %v404_v24, %v401_v23 }
 0x2c0   : > { %407 = vst.msk [vmem:[#allocation3] sm:$0xff] %vm295_vm2, %v405_v25 }
 0x2c1   : > { %v412_v32 = vpop.permute.xlu1 %411 }
 0x2c2   : > { %v414_v33 = vmul.f32 %v412_v32, %v408_v31 }
 0x2c7   : > { %v494_v26 = vld [vmem:[#allocation3] sm:$0xff] }
 0x2c8   : > { %768 = vrcp.f32 %v494_v26 }
 0x2d5   : > { %v769_v27 = vpop.eup %768 }
 0x2d6   : > { %v496_v28 = vmul.f32 %v769_v27, %v494_v26 }
 0x2d8   : > { %v497_v29 = vsub.f32 2.0, %v496_v28 }
 0x2da   : > { %v498_v30 = vmul.f32 %v769_v27, %v497_v29 }
 0x2dc   : > { %502 = vperm.xlu1 %763, %v498_v30  }
 0x2f3   : > { %v484_v34 = vpop.f32.mrf.mxu1 }
 0x2f4   : > { %v488_v35 = vadd.f32 %v484_v34, %v414_v33 }
 0x2f5   : > { %v685_v36 = vpop.f32.mrf.mxu1 }
 0x2f6   : > { %489 = vst.msk [vmem:[#allocation4] sm:$0xff] %vm298_vm0, %v488_v35 }
 0x2fd   : > { %v499_v37 = vld [vmem:[#allocation4] sm:$0xff] }
 0x357   : > { %v503_v38 = vpop.permute.xlu1 %502 }
 0x358   : > { %v505_v39 = vmul.f32 %v503_v38, %v499_v37 }
 0x35a   : > { %506 = vst.msk [vmem:[%s290_s18] sm:$0xff] %vm298_vm0, %v505_v39 }
 0x35b   : > { %867 = shalt.err (!%p864_p4)
}
 0x35c   : > { %s868_s10 = scalar_lea.hbm %s520_s25, 128  ;;  %s872_s12 = scalar_lea.hbm %s1194_s5, 512 }
 0x35d   : > { %p869_p0 = scmp.ne.s32.totalorder %s520_s25, %s868_s10  ;;  %p873_p6 = scmp.lt.s32.totalorder %s520_s25, %s1194_s5 }
 0x35e   : > { %p874_p7 = scmp.lt.s32.totalorder %s872_s12, %s868_s10 }
 0x35f   : > { %p870_p1 = pnand %p869_p0, %p1036_p9 }
 0x360   : > { %p875_p8 = por %p874_p7, %p873_p6 }
 0x361   : > { %p871_p5 = pneg %p870_p1 }
 0x363   : > { %p876_p13 = pnand %p875_p8, %p871_p5 }
 0x365   : > { %879 = shalt.err (!%p876_p13)
}
 0x366   : > { %692 = dma.vmem_to_hbm [thread:$0]  (%p1036_p9), %s523_s14, 128, %s520_s25, %s508_s28  }
 0x367 PF: > { %p709_p2 = scmp.ge.s32.totalorder %s938_s24, 2  ;;  %s534_s11 = sand.u32 1, %s918_s1  }
 0x368   : > { %s535_s19 = scalar_lea.sflag [#allocation10], %s534_s11 }
 0x369   : > { %p705_p3 = pnand %p709_p2, %p1043_p11 }
 0x36b   : > { %p706_p10 = pneg %p705_p3 }
 0x36d   : > { %913 = dma.done.wait (%p706_p10), %s535_s19, 128  }
 0x36e   : > { %915 = vsyncadd (%p706_p10), %s535_s19, 4294967168  ;;  %s26_s24 = sadd.s32 1, %s938_s24   ;;  %s1209_s22 = sld [smem:[#allocation18_spill]] }
 0x36f   : > { %p23_p12 = scmp.ge.s32.totalorder %s26_s24, 6   ;;  %s1210_s23 = sld [smem:[#allocation19_spill]] }
 0x370   : > { %s1211_s1 = smov %s922_s20  ;;  %s1212_s20 = smov %s926_s21 }
 0x371   : > { %s1213_s21 = smov %s1041_s7  ;;  %25 = sbr.rel (!%p23_p12) target bundleno = 11 (0xb), region = 109 }
 0x376   :  { %540 = vsyncpa [#allocation9], 1 }
 0x377   :  { %542 = vsyncpa [#allocation9 + $0x1], 1 }
 0x378   :  { %543 = vsyncpa [#allocation12], 1 }
 0x379   :  { %545 = vsyncpa [#allocation12 + $0x1], 1 }
 0x37a   :  { %546 = vsyncpa [#allocation10], 1 }
 0x37b   :  { %548 = vsyncpa [#allocation10 + $0x1], 1 }

</bundles_post_ra>
